<compile_context>
chip_gen: v5e
topology: v5e:2x2
jax: 0.10.0
libtpu: 0.0.40
codegen_flags: <defaults>
</compile_context>

<pallas_src>
import functools
from typing import NamedTuple, Tuple

import jax
import jax.numpy as jnp
from jax.experimental import pallas as pl
from jax.experimental.pallas import tpu as pltpu


def _round_up(x: int, m: int) -> int:
    return (x + m - 1) // m * m


def _round_down(x: int, m: int) -> int:
    return (x // m) * m


def _hidden_align(d: int) -> int:
    # Always lane-align to 128; prefer 256 for large hidden dims (v6e/v7x MXU
    # is 2x256x256 -- 256-aligned K/N tiles feed it at peak).
    return 256 if d >= 256 else 128


class PreparedMLP(NamedTuple):
    weights: Tuple[jax.Array, ...]   # layer i: (pdims[i], pdims[i+1]), compute dtype
    biases: Tuple[jax.Array, ...]    # layer i: (1, pdims[i+1]), float32
    dims: Tuple[int, ...]            # original feature dims [in, *hidden, out]
    pdims: Tuple[int, ...]           # padded dims (hidden padded; in/out unpadded)


def prepare_mlp_params(params, compute_dtype=None) -> PreparedMLP:
    """Pad (hidden dims only) and cast weights ONCE, outside the hot path.

    Zero padding is exact: padded hidden columns evaluate to 0 (zero weight
    columns + zero bias), survive ReLU as 0, and hit zero weight rows next.
    """
    num_layers = len(params)
    dims = [params[0][0].shape[0]] + [w.shape[1] for (w, _) in params]
    pdims = list(dims)
    for i in range(1, num_layers):      # only hidden dims get padded
        pdims[i] = _round_up(dims[i], _hidden_align(dims[i]))

    weights, biases = [], []
    for li, (w, b) in enumerate(params):
        kp, np_ = pdims[li], pdims[li + 1]
        w_dtype = compute_dtype if compute_dtype is not None else w.dtype
        w_p = jnp.zeros((kp, np_), w_dtype).at[: w.shape[0], : w.shape[1]].set(
            w.astype(w_dtype)
        )
        # Bias stays f32: bias + ReLU epilogue is done in f32 (v5e VPU has no bf16).
        b_p = jnp.zeros((1, np_), jnp.float32).at[0, : b.shape[0]].set(
            b.astype(jnp.float32)
        )
        weights.append(w_p)
        biases.append(b_p)
    return PreparedMLP(tuple(weights), tuple(biases), tuple(dims), tuple(pdims))


def _mlp_fused_kernel(*refs, num_layers: int):
    """refs = (x_ref, w0, b0, ..., w_{L-1}, b_{L-1}, o_ref). One batch tile."""
    x_ref, o_ref = refs[0], refs[-1]
    wb = refs[1:-1]
    compute_dtype = wb[0].dtype                 # weights pre-cast at prepare time
    h = x_ref[...].astype(compute_dtype)
    for li in range(num_layers):
        w = wb[2 * li][...]
        b = wb[2 * li + 1][...]                 # (1, N) f32, broadcasts over rows
        y = jnp.dot(h, w, preferred_element_type=jnp.float32)   # MXU, f32 acc
        y = y + b                               # f32 epilogue
        if li < num_layers - 1:
            y = jnp.maximum(y, 0.0)
            # Dropout: module default dropprob=0.0 (and eval mode) -> identity.
            # TODO(synk): training-mode dropout with p>0 would build a mask here
            # using pltpu.prng_seed + pltpu.prng_random_bits.
            y = y.astype(compute_dtype)         # cut vreg pressure between layers
        h = y
    o_ref[...] = h.astype(o_ref.dtype)


def mlp_forward_fused(prepared: PreparedMLP, x, *, block_m: int = 512):
    """Fused MLP forward: one pallas_call, grid over batch tiles only."""
    M, K0 = x.shape
    num_layers = len(prepared.weights)
    dims, pdims = prepared.dims, prepared.pdims
    assert K0 == dims[0], (K0, dims[0])
    out_d = dims[-1]

    # Batch tile: multiple of 8 (or the full batch when M < 8); never larger
    # than M so only the trailing block is partial (masked writes).
    block_m = max(8, _round_up(block_m, 8))
    tm = min(block_m, _round_down(M, 8)) if M >= 8 else M
    grid = (pl.cdiv(M, tm),)

    itemsize = jnp.dtype(x.dtype).itemsize
    weight_bytes = sum(
        int(a.size) * jnp.dtype(a.dtype).itemsize
        for a in (*prepared.weights, *prepared.biases)
    )
    act_bytes = 2 * tm * max(pdims) * 4            # two live f32 intermediates
    io_tile_bytes = 2 * tm * (K0 + out_d) * itemsize   # double-buffered x / out tiles

    # Generation-aware VMEM budget (v7x: 64 MiB per TC; v5e/v6e: 128 MiB).
    try:
        phys_vmem = int(pltpu.get_tpu_info().vmem_capacity_bytes)
    except Exception:
        phys_vmem = 64 * 1024 * 1024               # conservative (v7x) fallback
    budget = phys_vmem * 3 // 4

    flops = 2 * M * sum(pdims[i] * pdims[i + 1] for i in range(num_layers))
    bytes_accessed = M * K0 * itemsize + weight_bytes + M * out_d * itemsize

    args = [x]
    for w, b in zip(prepared.weights, prepared.biases):
        args += [w, b]

    def run(single_buffer_weights: bool):
        wb_kwargs = {}
        weight_buffers = 2
        if single_buffer_weights and hasattr(pl, "Buffered"):
            # Constant index_map -> blocks never change across grid steps; a
            # single VMEM buffer suffices (default double-buffering only
            # doubles the resident weight footprint).
            wb_kwargs = dict(pipeline_mode=pl.Buffered(1))
            weight_buffers = 1

        needed = weight_bytes * weight_buffers + io_tile_bytes + act_bytes + (2 << 20)
        if needed > budget:
            # TODO(synk): fall back to a per-layer (M,N,K)-tiled matmul kernel
            # when the weight set cannot stay resident in VMEM.
            raise NotImplementedError(
                f"MLP VMEM footprint {needed / 2**20:.1f} MiB exceeds budget "
                f"{budget / 2**20:.1f} MiB on this TPU generation."
            )
        vmem_limit = int(min(budget, max(2 * needed, 16 * 1024 * 1024)))

        in_specs = [pl.BlockSpec((tm, K0), lambda i: (i, 0))]
        for li in range(num_layers):
            in_specs.append(
                pl.BlockSpec((pdims[li], pdims[li + 1]), lambda i: (0, 0), **wb_kwargs)
            )
            in_specs.append(
                pl.BlockSpec((1, pdims[li + 1]), lambda i: (0, 0), **wb_kwargs)
            )
        out_spec = pl.BlockSpec((tm, out_d), lambda i: (i, 0))

        kernel = functools.partial(_mlp_fused_kernel, num_layers=num_layers)
        return pl.pallas_call(
            kernel,
            out_shape=jax.ShapeDtypeStruct((M, out_d), x.dtype),
            grid=grid,
            in_specs=in_specs,
            out_specs=out_spec,
            compiler_params=pltpu.CompilerParams(
                dimension_semantics=("parallel",),
                vmem_limit_bytes=vmem_limit,
            ),
            cost_estimate=pl.CostEstimate(
                flops=flops, transcendentals=0, bytes_accessed=bytes_accessed
            ),
        )(*args)

    try:
        return run(single_buffer_weights=True)
    except NotImplementedError:
        raise
    except Exception:
        # Some builds may reject pl.Buffered(1); retry with default buffering
        # (correctness unaffected, only weight VMEM footprint doubles).
        return run(single_buffer_weights=False)


def init_mlp_params(key, input_d, structure, output_d):
    """Deterministic init mimicking nn.Linear's default U(-1/sqrt(fan_in), +)."""
    struc = [input_d] + list(structure) + [output_d]
    params = []
    for i in range(len(struc) - 1):
        key, wk, bk = jax.random.split(key, 3)
        bound = 1.0 / float(struc[i] ** 0.5)
        w = jax.random.uniform(
            wk, (struc[i], struc[i + 1]), jnp.float32, minval=-bound, maxval=bound
        )
        b = jax.random.uniform(
            bk, (struc[i + 1],), jnp.float32, minval=-bound, maxval=bound
        )
        params.append((w, b))
    return params


def mlp_reference(params, x):
    """Pure-JAX reference for correctness checking."""
    for (w, b) in params[:-1]:
        x = jnp.maximum(x @ w + b, 0.0)
    w, b = params[-1]
    return x @ w + b


if __name__ == "__main__":
    key = jax.random.PRNGKey(0)
    pkey, k1, k2, k3 = jax.random.split(key, 4)

    input_d, structure, output_d = 16, [32, 32], 8
    params = init_mlp_params(pkey, input_d, structure, output_d)

    # --- f32 operand path (exact vs reference) ---
    prep_f32 = prepare_mlp_params(params)

    x_small = jax.random.normal(k1, (8, input_d), jnp.float32)
    y = jax.block_until_ready(mlp_forward_fused(prep_f32, x_small))
    y_ref = mlp_reference(params, x_small)
    assert y.shape == (8, output_d), y.shape
    assert jnp.allclose(y, y_ref, atol=1e-5, rtol=1e-5), "small-batch mismatch"

    # Multi-step grid + partial trailing batch block (300 not divisible by 128).
    x_big = jax.random.normal(k2, (300, input_d), jnp.float32)
    y = jax.block_until_ready(mlp_forward_fused(prep_f32, x_big, block_m=128))
    y_ref = mlp_reference(params, x_big)
    assert y.shape == (300, output_d), y.shape
    assert jnp.allclose(y, y_ref, atol=1e-5, rtol=1e-5), "big-batch mismatch"

    # Batch not a multiple of 8 (partial trailing block, tm=8).
    x_odd = jax.random.normal(k3, (13, input_d), jnp.float32)
    y = jax.block_until_ready(mlp_forward_fused(prep_f32, x_odd))
    y_ref = mlp_reference(params, x_odd)
    assert y.shape == (13, output_d), y.shape
    assert jnp.allclose(y, y_ref, atol=1e-5, rtol=1e-5), "odd-batch mismatch"

    # --- bf16 operand path (f32 accumulation): looser tolerance ---
    prep_bf16 = prepare_mlp_params(params, compute_dtype=jnp.bfloat16)
    y = jax.block_until_ready(mlp_forward_fused(prep_bf16, x_big))
    y_ref = mlp_reference(params, x_big)
    assert y.shape == (300, output_d), y.shape
    assert jnp.allclose(y, y_ref, atol=5e-2, rtol=5e-2), "bf16-path mismatch"

    print("KERNEL_OK")
</pallas_src>

<mosaic_0001>
module attributes {stable_mosaic.version = 11 : i64} {
  func.func @_mlp_fused_kernel(%arg0: i32, %arg1: memref<8x16xf32, #tpu.memory_space<vmem>>, %arg2: memref<16x128xf32, #tpu.memory_space<vmem>>, %arg3: memref<1x128xf32, #tpu.memory_space<vmem>>, %arg4: memref<128x128xf32, #tpu.memory_space<vmem>>, %arg5: memref<1x128xf32, #tpu.memory_space<vmem>>, %arg6: memref<128x8xf32, #tpu.memory_space<vmem>>, %arg7: memref<1x8xf32, #tpu.memory_space<vmem>>, %arg8: memref<8x8xf32, #tpu.memory_space<vmem>>) attributes {dimension_semantics = [#tpu.dimension_semantics<parallel>], iteration_bounds = array<i64: 1>, scalar_prefetch = 0 : i64, scratch_operands = 0 : i64, tpu.core_type = #tpu.core_type<tc>, window_params = [{transform_indices = @transform_0, window_bounds = array<i64: 8, 16>}, {pipeline_mode = #tpu.pipeline_mode<synchronous>, transform_indices = @transform_1, window_bounds = array<i64: 16, 128>}, {pipeline_mode = #tpu.pipeline_mode<synchronous>, transform_indices = @transform_2, window_bounds = array<i64: 1, 128>}, {pipeline_mode = #tpu.pipeline_mode<synchronous>, transform_indices = @transform_3, window_bounds = array<i64: 128, 128>}, {pipeline_mode = #tpu.pipeline_mode<synchronous>, transform_indices = @transform_4, window_bounds = array<i64: 1, 128>}, {pipeline_mode = #tpu.pipeline_mode<synchronous>, transform_indices = @transform_5, window_bounds = array<i64: 128, 8>}, {pipeline_mode = #tpu.pipeline_mode<synchronous>, transform_indices = @transform_6, window_bounds = array<i64: 1, 8>}, {transform_indices = @transform_7, window_bounds = array<i64: 8, 8>}]} {
    %c0 = arith.constant 0 : index
    %c0_0 = arith.constant 0 : index
    %0 = vector.load %arg1[%c0, %c0_0] : memref<8x16xf32, #tpu.memory_space<vmem>>, vector<8x16xf32>
    %c0_1 = arith.constant 0 : index
    %c0_2 = arith.constant 0 : index
    %1 = vector.load %arg2[%c0_1, %c0_2] : memref<16x128xf32, #tpu.memory_space<vmem>>, vector<16x128xf32>
    %c0_3 = arith.constant 0 : index
    %c0_4 = arith.constant 0 : index
    %2 = vector.load %arg3[%c0_3, %c0_4] : memref<1x128xf32, #tpu.memory_space<vmem>>, vector<1x128xf32>
    %cst = arith.constant dense<0.000000e+00> : vector<8x128xf32>
    %3 = tpu.matmul %0, %1, %cst {dimension_numbers = #tpu.dot_dimension_numbers<[1], [0], [0], [1], [0, 0, 1, 1], [], []>} : vector<8x16xf32>, vector<16x128xf32>, vector<8x128xf32> -> vector<8x128xf32>
    %4 = vector.broadcast %2 : vector<1x128xf32> to vector<8x128xf32>
    %5 = arith.addf %3, %4 : vector<8x128xf32>
    %cst_5 = arith.constant 0.000000e+00 : f32
    %6 = vector.broadcast %cst_5 : f32 to vector<8x128xf32>
    %7 = arith.maximumf %5, %6 : vector<8x128xf32>
    %c0_6 = arith.constant 0 : index
    %c0_7 = arith.constant 0 : index
    %8 = vector.load %arg4[%c0_6, %c0_7] : memref<128x128xf32, #tpu.memory_space<vmem>>, vector<128x128xf32>
    %c0_8 = arith.constant 0 : index
    %c0_9 = arith.constant 0 : index
    %9 = vector.load %arg5[%c0_8, %c0_9] : memref<1x128xf32, #tpu.memory_space<vmem>>, vector<1x128xf32>
    %cst_10 = arith.constant dense<0.000000e+00> : vector<8x128xf32>
    %10 = tpu.matmul %7, %8, %cst_10 {dimension_numbers = #tpu.dot_dimension_numbers<[1], [0], [0], [1], [0, 0, 1, 1], [], []>} : vector<8x128xf32>, vector<128x128xf32>, vector<8x128xf32> -> vector<8x128xf32>
    %11 = vector.broadcast %9 : vector<1x128xf32> to vector<8x128xf32>
    %12 = arith.addf %10, %11 : vector<8x128xf32>
    %cst_11 = arith.constant 0.000000e+00 : f32
    %13 = vector.broadcast %cst_11 : f32 to vector<8x128xf32>
    %14 = arith.maximumf %12, %13 : vector<8x128xf32>
    %c0_12 = arith.constant 0 : index
    %c0_13 = arith.constant 0 : index
    %15 = vector.load %arg6[%c0_12, %c0_13] : memref<128x8xf32, #tpu.memory_space<vmem>>, vector<128x8xf32>
    %c0_14 = arith.constant 0 : index
    %c0_15 = arith.constant 0 : index
    %16 = vector.load %arg7[%c0_14, %c0_15] : memref<1x8xf32, #tpu.memory_space<vmem>>, vector<1x8xf32>
    %cst_16 = arith.constant dense<0.000000e+00> : vector<8x8xf32>
    %17 = tpu.matmul %14, %15, %cst_16 {dimension_numbers = #tpu.dot_dimension_numbers<[1], [0], [0], [1], [0, 0, 1, 1], [], []>} : vector<8x128xf32>, vector<128x8xf32>, vector<8x8xf32> -> vector<8x8xf32>
    %18 = vector.broadcast %16 : vector<1x8xf32> to vector<8x8xf32>
    %19 = arith.addf %17, %18 : vector<8x8xf32>
    %c0_17 = arith.constant 0 : index
    %c0_18 = arith.constant 0 : index
    %20 = vector.load %arg8[%c0_17, %c0_18] : memref<8x8xf32, #tpu.memory_space<vmem>>, vector<8x8xf32>
    tpu.vector_store %arg8[%c0_17, %c0_18], %19 {strides = array<i32>} : memref<8x8xf32, #tpu.memory_space<vmem>>, vector<8x8xf32>,
    return
  }
  func.func @transform_0(%arg0: i32) -> (i32, i32) {
    %c0_i32 = arith.constant 0 : i32
    %c0_i32_0 = arith.constant 0 : i32
    return %arg0, %c0_i32 : i32, i32
  }
  func.func @transform_1(%arg0: i32) -> (i32, i32) {
    %c0_i32 = arith.constant 0 : i32
    %c0_i32_0 = arith.constant 0 : i32
    %c0_i32_1 = arith.constant 0 : i32
    return %c0_i32, %c0_i32_0 : i32, i32
  }
  func.func @transform_2(%arg0: i32) -> (i32, i32) {
    %c0_i32 = arith.constant 0 : i32
    %c0_i32_0 = arith.constant 0 : i32
    %c0_i32_1 = arith.constant 0 : i32
    return %c0_i32, %c0_i32_0 : i32, i32
  }
  func.func @transform_3(%arg0: i32) -> (i32, i32) {
    %c0_i32 = arith.constant 0 : i32
    %c0_i32_0 = arith.constant 0 : i32
    %c0_i32_1 = arith.constant 0 : i32
    return %c0_i32, %c0_i32_0 : i32, i32
  }
  func.func @transform_4(%arg0: i32) -> (i32, i32) {
    %c0_i32 = arith.constant 0 : i32
    %c0_i32_0 = arith.constant 0 : i32
    %c0_i32_1 = arith.constant 0 : i32
    return %c0_i32, %c0_i32_0 : i32, i32
  }
  func.func @transform_5(%arg0: i32) -> (i32, i32) {
    %c0_i32 = arith.constant 0 : i32
    %c0_i32_0 = arith.constant 0 : i32
    %c0_i32_1 = arith.constant 0 : i32
    return %c0_i32, %c0_i32_0 : i32, i32
  }
  func.func @transform_6(%arg0: i32) -> (i32, i32) {
    %c0_i32 = arith.constant 0 : i32
    %c0_i32_0 = arith.constant 0 : i32
    %c0_i32_1 = arith.constant 0 : i32
    return %c0_i32, %c0_i32_0 : i32, i32
  }
  func.func @transform_7(%arg0: i32) -> (i32, i32) {
    %c0_i32 = arith.constant 0 : i32
    %c0_i32_0 = arith.constant 0 : i32
    return %arg0, %c0_i32 : i32, i32
  }
}

module attributes {stable_mosaic.version = 11 : i64} {
  func.func @_mlp_fused_kernel(%arg0: i32, %arg1: memref<8x16xf32, #tpu.memory_space<vmem>>, %arg2: memref<16x128xf32, #tpu.memory_space<vmem>>, %arg3: memref<1x128xf32, #tpu.memory_space<vmem>>, %arg4: memref<128x128xf32, #tpu.memory_space<vmem>>, %arg5: memref<1x128xf32, #tpu.memory_space<vmem>>, %arg6: memref<128x8xf32, #tpu.memory_space<vmem>>, %arg7: memref<1x8xf32, #tpu.memory_space<vmem>>, %arg8: memref<8x8xf32, #tpu.memory_space<vmem>>) attributes {dimension_semantics = [#tpu.dimension_semantics<parallel>], iteration_bounds = array<i64: 1>, scalar_prefetch = 0 : i64, scratch_operands = 0 : i64, tpu.core_type = #tpu.core_type<tc>, window_params = [{transform_indices = @transform_0, window_bounds = array<i64: 8, 16>}, {pipeline_mode = #tpu.pipeline_mode<synchronous>, transform_indices = @transform_1, window_bounds = array<i64: 16, 128>}, {pipeline_mode = #tpu.pipeline_mode<synchronous>, transform_indices = @transform_2, window_bounds = array<i64: 1, 128>}, {pipeline_mode = #tpu.pipeline_mode<synchronous>, transform_indices = @transform_3, window_bounds = array<i64: 128, 128>}, {pipeline_mode = #tpu.pipeline_mode<synchronous>, transform_indices = @transform_4, window_bounds = array<i64: 1, 128>}, {pipeline_mode = #tpu.pipeline_mode<synchronous>, transform_indices = @transform_5, window_bounds = array<i64: 128, 8>}, {pipeline_mode = #tpu.pipeline_mode<synchronous>, transform_indices = @transform_6, window_bounds = array<i64: 1, 8>}, {transform_indices = @transform_7, window_bounds = array<i64: 8, 8>}]} {
    %c0 = arith.constant 0 : index
    %c0_0 = arith.constant 0 : index
    %0 = vector.load %arg1[%c0, %c0_0] : memref<8x16xf32, #tpu.memory_space<vmem>>, vector<8x16xf32>
    %c0_1 = arith.constant 0 : index
    %c0_2 = arith.constant 0 : index
    %1 = vector.load %arg2[%c0_1, %c0_2] : memref<16x128xf32, #tpu.memory_space<vmem>>, vector<16x128xf32>
    %c0_3 = arith.constant 0 : index
    %c0_4 = arith.constant 0 : index
    %2 = vector.load %arg3[%c0_3, %c0_4] : memref<1x128xf32, #tpu.memory_space<vmem>>, vector<1x128xf32>
    %cst = arith.constant dense<0.000000e+00> : vector<8x128xf32>
    %3 = tpu.matmul %0, %1, %cst {dimension_numbers = #tpu.dot_dimension_numbers<[1], [0], [0], [1], [0, 0, 1, 1], [], []>} : vector<8x16xf32>, vector<16x128xf32>, vector<8x128xf32> -> vector<8x128xf32>
    %4 = vector.broadcast %2 : vector<1x128xf32> to vector<8x128xf32>
    %5 = arith.addf %3, %4 : vector<8x128xf32>
    %cst_5 = arith.constant 0.000000e+00 : f32
    %6 = vector.broadcast %cst_5 : f32 to vector<8x128xf32>
    %7 = arith.maximumf %5, %6 : vector<8x128xf32>
    %c0_6 = arith.constant 0 : index
    %c0_7 = arith.constant 0 : index
    %8 = vector.load %arg4[%c0_6, %c0_7] : memref<128x128xf32, #tpu.memory_space<vmem>>, vector<128x128xf32>
    %c0_8 = arith.constant 0 : index
    %c0_9 = arith.constant 0 : index
    %9 = vector.load %arg5[%c0_8, %c0_9] : memref<1x128xf32, #tpu.memory_space<vmem>>, vector<1x128xf32>
    %cst_10 = arith.constant dense<0.000000e+00> : vector<8x128xf32>
    %10 = tpu.matmul %7, %8, %cst_10 {dimension_numbers = #tpu.dot_dimension_numbers<[1], [0], [0], [1], [0, 0, 1, 1], [], []>} : vector<8x128xf32>, vector<128x128xf32>, vector<8x128xf32> -> vector<8x128xf32>
    %11 = vector.broadcast %9 : vector<1x128xf32> to vector<8x128xf32>
    %12 = arith.addf %10, %11 : vector<8x128xf32>
    %cst_11 = arith.constant 0.000000e+00 : f32
    %13 = vector.broadcast %cst_11 : f32 to vector<8x128xf32>
    %14 = arith.maximumf %12, %13 : vector<8x128xf32>
    %c0_12 = arith.constant 0 : index
    %c0_13 = arith.constant 0 : index
    %15 = vector.load %arg6[%c0_12, %c0_13] : memref<128x8xf32, #tpu.memory_space<vmem>>, vector<128x8xf32>
    %c0_14 = arith.constant 0 : index
    %c0_15 = arith.constant 0 : index
    %16 = vector.load %arg7[%c0_14, %c0_15] : memref<1x8xf32, #tpu.memory_space<vmem>>, vector<1x8xf32>
    %cst_16 = arith.constant dense<0.000000e+00> : vector<8x8xf32>
    %17 = tpu.matmul %14, %15, %cst_16 {dimension_numbers = #tpu.dot_dimension_numbers<[1], [0], [0], [1], [0, 0, 1, 1], [], []>} : vector<8x128xf32>, vector<128x8xf32>, vector<8x8xf32> -> vector<8x8xf32>
    %18 = vector.broadcast %16 : vector<1x8xf32> to vector<8x8xf32>
    %19 = arith.addf %17, %18 : vector<8x8xf32>
    %c0_17 = arith.constant 0 : index
    %c0_18 = arith.constant 0 : index
    %20 = vector.load %arg8[%c0_17, %c0_18] : memref<8x8xf32, #tpu.memory_space<vmem>>, vector<8x8xf32>
    tpu.vector_store %arg8[%c0_17, %c0_18], %19 {strides = array<i32>} : memref<8x8xf32, #tpu.memory_space<vmem>>, vector<8x8xf32>,
    return
  }
  func.func @transform_0(%arg0: i32) -> (i32, i32) {
    %c0_i32 = arith.constant 0 : i32
    %c0_i32_0 = arith.constant 0 : i32
    return %arg0, %c0_i32 : i32, i32
  }
  func.func @transform_1(%arg0: i32) -> (i32, i32) {
    %c0_i32 = arith.constant 0 : i32
    %c0_i32_0 = arith.constant 0 : i32
    %c0_i32_1 = arith.constant 0 : i32
    return %c0_i32, %c0_i32_0 : i32, i32
  }
  func.func @transform_2(%arg0: i32) -> (i32, i32) {
    %c0_i32 = arith.constant 0 : i32
    %c0_i32_0 = arith.constant 0 : i32
    %c0_i32_1 = arith.constant 0 : i32
    return %c0_i32, %c0_i32_0 : i32, i32
  }
  func.func @transform_3(%arg0: i32) -> (i32, i32) {
    %c0_i32 = arith.constant 0 : i32
    %c0_i32_0 = arith.constant 0 : i32
    %c0_i32_1 = arith.constant 0 : i32
    return %c0_i32, %c0_i32_0 : i32, i32
  }
  func.func @transform_4(%arg0: i32) -> (i32, i32) {
    %c0_i32 = arith.constant 0 : i32
    %c0_i32_0 = arith.constant 0 : i32
    %c0_i32_1 = arith.constant 0 : i32
    return %c0_i32, %c0_i32_0 : i32, i32
  }
  func.func @transform_5(%arg0: i32) -> (i32, i32) {
    %c0_i32 = arith.constant 0 : i32
    %c0_i32_0 = arith.constant 0 : i32
    %c0_i32_1 = arith.constant 0 : i32
    return %c0_i32, %c0_i32_0 : i32, i32
  }
  func.func @transform_6(%arg0: i32) -> (i32, i32) {
    %c0_i32 = arith.constant 0 : i32
    %c0_i32_0 = arith.constant 0 : i32
    %c0_i32_1 = arith.constant 0 : i32
    return %c0_i32, %c0_i32_0 : i32, i32
  }
  func.func @transform_7(%arg0: i32) -> (i32, i32) {
    %c0_i32 = arith.constant 0 : i32
    %c0_i32_0 = arith.constant 0 : i32
    return %arg0, %c0_i32 : i32, i32
  }
}

</mosaic_0001>

<bundles_post_ra>
// kernel: tpu_custom_call.1
= control target key start
LH: loop header
LB: loop body
LE: loop exit
PB: predicated region body
PF: predicated region fallthrough
CT: control target
= control target key end

     0   :  { %12 = vsyncpa [#allocation3], 0  ;;  %s393_s0 = inlined_call_operand.vmem [shape: f32[8,16], index: 0, kind: input, shape index: {}]   ;;  %s394_s1 = inlined_call_operand.hbm [shape: f32[16,128], index: 1, kind: input, shape index: {}]   ;;  %s395_s2 = inlined_call_operand.vmem [shape: f32[1,128], index: 2, kind: input, shape index: {}]   ;;  %s396_s3 = inlined_call_operand.vmem [shape: f32[128,128], index: 3, kind: input, shape index: {}]   ;;  %s397_s4 = inlined_call_operand.vmem [shape: f32[1,128], index: 4, kind: input, shape index: {}]   ;;  %s398_s5 = inlined_call_operand.vmem [shape: f32[128,8], index: 5, kind: input, shape index: {}]   ;;  %s399_s6 = inlined_call_operand.vmem [shape: f32[1,8], index: 6, kind: input, shape index: {}]   ;;  %s400_s7 = inlined_call_operand.hbm [shape: f32[8,8], index: 7, kind: output, shape index: {}]  }
   0x1   :  { %13 = vsyncpa [#allocation4], 0  ;;  %s20_s26 = sshll.u32 %s394_s1, 4  ;;  %s235_s27 = smov [#allocation2]   ;;  %s21_s26 = int_to_ptr.hbm [resolvable:$true] %s20_s26 }
   0x2   :  { %s22_s28 = sshll.u32 %s235_s27, 4  ;;  %s236_s29 = smov 128   ;;  %s23_s28 = int_to_ptr.vmem [resolvable:$true] %s22_s28 }
   0x3   :  { %s237_s30 = smov 8  }
   0x4   :  { %28 = dma.hbm_to_vmem [thread:$0]  %s21_s26, 256, %s23_s28, [#allocation3], %s236_s29, %s236_s29, %s237_s30  }
   0x5   :  { %231 = dma.done.wait [#allocation3], 256  }
   0x6   :  { %232 = vsyncadd [#allocation3], 4294967040  ;;  %v45_v0 = vld [vmem:[#allocation2 + $0x8] sm:$0xff]  ;;  %v44_v1 = vld [vmem:[#allocation2] sm:$0xff]  ;;  %vm50_vm0 = vcmask 130048   ;;  %s238_s25 = smov [#allocation5]  }
   0x7   :  { %68 = vmatpush.msra.mxu0 %v45_v0  ;;  %v43_v2 = vld [vmem:[%s393_s0] sm:$0xff]  ;;  %v90_v3 = vld [vmem:[%s396_s3 + $0x78] sm:$0xff]  ;;  %v89_v4 = vld [vmem:[%s396_s3 + $0x70] sm:$0xff]  ;;  %s163_s26 = sshll.u32 %s238_s25, 4  ;;  %s165_s29 = sshll.u32 %s400_s7, 4  ;;  %vm156_vm1 = vcmask 64512   ;;  %s164_s26 = int_to_ptr.vmem [resolvable:$true] %s163_s26  ;;  %s166_s29 = int_to_ptr.hbm [resolvable:$true] %s165_s29 }
   0x8   :  { %95 = vmatpush.msra.mxu1 %v90_v3  ;;  %v88_v5 = vld [vmem:[%s396_s3 + $0x68] sm:$0xff]  ;;  %v87_v6 = vld [vmem:[%s396_s3 + $0x60] sm:$0xff]  ;;  %v86_v7 = vld [vmem:[%s396_s3 + $0x58] sm:$0xff] }
   0x9   :  { %69 = vmatpush.msra.mxu0 %v44_v1  ;;  %v85_v8 = vld [vmem:[%s396_s3 + $0x50] sm:$0xff]  ;;  %v84_v9 = vld [vmem:[%s396_s3 + $0x48] sm:$0xff]  ;;  %v83_v10 = vld [vmem:[%s396_s3 + $0x40] sm:$0xff] }
   0xa   :  { %175 = vmatmul.msk.f32.vlgmr.msra.gmra.mxu0 %vm50_vm0, %v43_v2  ;;  %96 = vmatpush.msra.mxu1 %v89_v4  ;;  %v82_v11 = vld [vmem:[%s396_s3 + $0x38] sm:$0xff]  ;;  %v81_v12 = vld [vmem:[%s396_s3 + $0x30] sm:$0xff]  ;;  %v80_v13 = vld [vmem:[%s396_s3 + $0x28] sm:$0xff] }
   0xb   :  { %v79_v14 = vld [vmem:[%s396_s3 + $0x20] sm:$0xff]  ;;  %v78_v15 = vld [vmem:[%s396_s3 + $0x18] sm:$0xff]  ;;  %v77_v16 = vld [vmem:[%s396_s3 + $0x10] sm:$0xff] }
   0xc   :  { %97 = vmatpush.msra.mxu1 %v88_v5  ;;  %v76_v17 = vld [vmem:[%s396_s3 + $0x8] sm:$0xff]  ;;  %v75_v18 = vld [vmem:[%s396_s3] sm:$0xff]  ;;  %v131_v19 = vld [vmem:[%s398_s5 + $0x78] sm:$0xff] }
   0xd   :  { %v130_v20 = vld [vmem:[%s398_s5 + $0x70] sm:$0xff]  ;;  %136 = vmatpush.msra.mxu2 %v131_v19  ;;  %v129_v21 = vld [vmem:[%s398_s5 + $0x68] sm:$0xff]  ;;  %v128_v22 = vld [vmem:[%s398_s5 + $0x60] sm:$0xff] }
   0xe   :  { %98 = vmatpush.msra.mxu1 %v87_v6  ;;  %v127_v23 = vld [vmem:[%s398_s5 + $0x58] sm:$0xff]  ;;  %v126_v24 = vld [vmem:[%s398_s5 + $0x50] sm:$0xff]  ;;  %v125_v25 = vld [vmem:[%s398_s5 + $0x48] sm:$0xff] }
   0xf   :  { %137 = vmatpush.msra.mxu2 %v130_v20  ;;  %v124_v26 = vld [vmem:[%s398_s5 + $0x40] sm:$0xff]  ;;  %v123_v27 = vld [vmem:[%s398_s5 + $0x38] sm:$0xff]  ;;  %v122_v28 = vld [vmem:[%s398_s5 + $0x30] sm:$0xff] }
  0x10   :  { %99 = vmatpush.msra.mxu1 %v86_v7  ;;  %v121_v29 = vld [vmem:[%s398_s5 + $0x28] sm:$0xff]  ;;  %v120_v30 = vld [vmem:[%s398_s5 + $0x20] sm:$0xff]  ;;  %v119_v31 = vld [vmem:[%s398_s5 + $0x18] sm:$0xff] }
  0x11   :  { %138 = vmatpush.msra.mxu2 %v129_v21  ;;  %v180_v32 = vld [vmem:[%s395_s2] ss:$0 sm:$0xff]  ;;  %v118_v36 = vld [vmem:[%s398_s5 + $0x10] sm:$0xff]  ;;  %v117_v37 = vld [vmem:[%s398_s5 + $0x8] sm:$0xff] }
  0x12   :  { %100 = vmatpush.msra.mxu1 %v85_v8  ;;  %v116_v38 = vld [vmem:[%s398_s5] sm:$0xff] }
  0x13   :  { %139 = vmatpush.msra.mxu2 %v128_v22  ;;  %v181_v39 = vld [vmem:[%s397_s4] ss:$0 sm:$0xff] }
  0x14   :  { %101 = vmatpush.msra.mxu1 %v84_v9  ;;  %v182_v43 = vld [vmem:[%s399_s6] ss:$0 sm:$0xff] }
  0x15   :  { %140 = vmatpush.msra.mxu2 %v127_v23 }
  0x16   :  { %102 = vmatpush.msra.mxu1 %v83_v10 }
  0x17   :  { %141 = vmatpush.msra.mxu2 %v126_v24 }
  0x18   :  { %103 = vmatpush.msra.mxu1 %v82_v11 }
  0x19   :  { %142 = vmatpush.msra.mxu2 %v125_v25 }
  0x1a   :  { %104 = vmatpush.msra.mxu1 %v81_v12 }
  0x1b   :  { %143 = vmatpush.msra.mxu2 %v124_v26 }
  0x1c   :  { %105 = vmatpush.msra.mxu1 %v80_v13 }
  0x1d   :  { %144 = vmatpush.msra.mxu2 %v123_v27 }
  0x1e   :  { %106 = vmatpush.msra.mxu1 %v79_v14 }
  0x1f   :  { %145 = vmatpush.msra.mxu2 %v122_v28 }
  0x20   :  { %107 = vmatpush.msra.mxu1 %v78_v15 }
  0x21   :  { %146 = vmatpush.msra.mxu2 %v121_v29 }
  0x22   :  { %108 = vmatpush.msra.mxu1 %v77_v16 }
  0x23   :  { %147 = vmatpush.msra.mxu2 %v120_v30 }
  0x24   :  { %109 = vmatpush.msra.mxu1 %v76_v17 }
  0x25   :  { %148 = vmatpush.msra.mxu2 %v119_v31 }
  0x26   :  { %110 = vmatpush.msra.mxu1 %v75_v18 }
  0x27   :  { %149 = vmatpush.msra.mxu2 %v118_v36 }
  0x29   :  { %150 = vmatpush.msra.mxu2 %v117_v37 }
  0x2b   :  { %151 = vmatpush.msra.mxu2 %v116_v38 }
  0x87   :  { %v71_v33 = vpop.f32.mrf.mxu0 }
  0x88   :  { %v72_v34 = vadd.f32 %v180_v32, %v71_v33 }
  0x8a   :  { %v74_v35 = vmax.f32 %v72_v34, 0.0 }
  0x8c   :  { %111 = vmatmul.f32.vlgmr.msra.gmra.mxu1 %v74_v35 }
 0x109   :  { %v112_v40 = vpop.f32.mrf.mxu1 }
 0x10a   :  { %v113_v41 = vadd.f32 %v181_v39, %v112_v40 }
 0x10c   :  { %v115_v42 = vmax.f32 %v113_v41, 0.0 }
 0x10e   :  { %152 = vmatmul.f32.vlgmr.msra.gmra.mxu2 %v115_v42 }
 0x191   :  { %v153_v44 = vpop.f32.mrf.mxu2 }
 0x192   :  { %v154_v45 = vadd.f32 %v182_v43, %v153_v44 }
 0x194   :  { %157 = vst.msk [vmem:[#allocation5] sm:$0xff] %vm156_vm1, %v154_v45 }
 0x195   :  { %168 = dma.vmem_to_hbm [thread:$0]  %s164_s26, 128, %s166_s29, [#allocation4]  }
 0x196   :  { %233 = dma.done.wait [#allocation4], 128  }
 0x197   :  { %234 = vsyncadd [#allocation4], 4294967168 }
 0x198   :  { %173 = vsyncpa [#allocation3], 1 }
 0x199   :  { %174 = vsyncpa [#allocation4], 1 }

// kernel: tpu_custom_call.1
= control target key start
LH: loop header
LB: loop body
LE: loop exit
PB: predicated region body
PF: predicated region fallthrough
CT: control target
= control target key end

     0   :  { %12 = vsyncpa [#allocation3], 0  ;;  %s393_s0 = inlined_call_operand.vmem [shape: f32[8,16], index: 0, kind: input, shape index: {}]   ;;  %s394_s1 = inlined_call_operand.hbm [shape: f32[16,128], index: 1, kind: input, shape index: {}]   ;;  %s395_s2 = inlined_call_operand.vmem [shape: f32[1,128], index: 2, kind: input, shape index: {}]   ;;  %s396_s3 = inlined_call_operand.vmem [shape: f32[128,128], index: 3, kind: input, shape index: {}]   ;;  %s397_s4 = inlined_call_operand.vmem [shape: f32[1,128], index: 4, kind: input, shape index: {}]   ;;  %s398_s5 = inlined_call_operand.vmem [shape: f32[128,8], index: 5, kind: input, shape index: {}]   ;;  %s399_s6 = inlined_call_operand.vmem [shape: f32[1,8], index: 6, kind: input, shape index: {}]   ;;  %s400_s7 = inlined_call_operand.hbm [shape: f32[8,8], index: 7, kind: output, shape index: {}]  }
   0x1   :  { %13 = vsyncpa [#allocation4], 0  ;;  %s20_s26 = sshll.u32 %s394_s1, 4  ;;  %s235_s27 = smov [#allocation2]   ;;  %s21_s26 = int_to_ptr.hbm [resolvable:$true] %s20_s26 }
   0x2   :  { %s22_s28 = sshll.u32 %s235_s27, 4  ;;  %s236_s29 = smov 128   ;;  %s23_s28 = int_to_ptr.vmem [resolvable:$true] %s22_s28 }
   0x3   :  { %s237_s30 = smov 8  }
   0x4   :  { %28 = dma.hbm_to_vmem [thread:$0]  %s21_s26, 256, %s23_s28, [#allocation3], %s236_s29, %s236_s29, %s237_s30  }
   0x5   :  { %231 = dma.done.wait [#allocation3], 256  }
   0x6   :  { %232 = vsyncadd [#allocation3], 4294967040  ;;  %v45_v0 = vld [vmem:[#allocation2 + $0x8] sm:$0xff]  ;;  %v44_v1 = vld [vmem:[#allocation2] sm:$0xff]  ;;  %vm50_vm0 = vcmask 130048   ;;  %s238_s25 = smov [#allocation5]  }
   0x7   :  { %68 = vmatpush.msra.mxu0 %v45_v0  ;;  %v43_v2 = vld [vmem:[%s393_s0] sm:$0xff]  ;;  %v90_v3 = vld [vmem:[%s396_s3 + $0x78] sm:$0xff]  ;;  %v89_v4 = vld [vmem:[%s396_s3 + $0x70] sm:$0xff]  ;;  %s163_s26 = sshll.u32 %s238_s25, 4  ;;  %s165_s29 = sshll.u32 %s400_s7, 4  ;;  %vm156_vm1 = vcmask 64512   ;;  %s164_s26 = int_to_ptr.vmem [resolvable:$true] %s163_s26  ;;  %s166_s29 = int_to_ptr.hbm [resolvable:$true] %s165_s29 }
   0x8   :  { %95 = vmatpush.msra.mxu1 %v90_v3  ;;  %v88_v5 = vld [vmem:[%s396_s3 + $0x68] sm:$0xff]  ;;  %v87_v6 = vld [vmem:[%s396_s3 + $0x60] sm:$0xff]  ;;  %v86_v7 = vld [vmem:[%s396_s3 + $0x58] sm:$0xff] }
   0x9   :  { %69 = vmatpush.msra.mxu0 %v44_v1  ;;  %v85_v8 = vld [vmem:[%s396_s3 + $0x50] sm:$0xff]  ;;  %v84_v9 = vld [vmem:[%s396_s3 + $0x48] sm:$0xff]  ;;  %v83_v10 = vld [vmem:[%s396_s3 + $0x40] sm:$0xff] }
   0xa   :  { %175 = vmatmul.msk.f32.vlgmr.msra.gmra.mxu0 %vm50_vm0, %v43_v2  ;;  %96 = vmatpush.msra.mxu1 %v89_v4  ;;  %v82_v11 = vld [vmem:[%s396_s3 + $0x38] sm:$0xff]  ;;  %v81_v12 = vld [vmem:[%s396_s3 + $0x30] sm:$0xff]  ;;  %v80_v13 = vld [vmem:[%s396_s3 + $0x28] sm:$0xff] }
   0xb   :  { %v79_v14 = vld [vmem:[%s396_s3 + $0x20] sm:$0xff]  ;;  %v78_v15 = vld [vmem:[%s396_s3 + $0x18] sm:$0xff]  ;;  %v77_v16 = vld [vmem:[%s396_s3 + $0x10] sm:$0xff] }
   0xc   :  { %97 = vmatpush.msra.mxu1 %v88_v5  ;;  %v76_v17 = vld [vmem:[%s396_s3 + $0x8] sm:$0xff]  ;;  %v75_v18 = vld [vmem:[%s396_s3] sm:$0xff]  ;;  %v131_v19 = vld [vmem:[%s398_s5 + $0x78] sm:$0xff] }
   0xd   :  { %v130_v20 = vld [vmem:[%s398_s5 + $0x70] sm:$0xff]  ;;  %136 = vmatpush.msra.mxu2 %v131_v19  ;;  %v129_v21 = vld [vmem:[%s398_s5 + $0x68] sm:$0xff]  ;;  %v128_v22 = vld [vmem:[%s398_s5 + $0x60] sm:$0xff] }
   0xe   :  { %98 = vmatpush.msra.mxu1 %v87_v6  ;;  %v127_v23 = vld [vmem:[%s398_s5 + $0x58] sm:$0xff]  ;;  %v126_v24 = vld [vmem:[%s398_s5 + $0x50] sm:$0xff]  ;;  %v125_v25 = vld [vmem:[%s398_s5 + $0x48] sm:$0xff] }
   0xf   :  { %137 = vmatpush.msra.mxu2 %v130_v20  ;;  %v124_v26 = vld [vmem:[%s398_s5 + $0x40] sm:$0xff]  ;;  %v123_v27 = vld [vmem:[%s398_s5 + $0x38] sm:$0xff]  ;;  %v122_v28 = vld [vmem:[%s398_s5 + $0x30] sm:$0xff] }
  0x10   :  { %99 = vmatpush.msra.mxu1 %v86_v7  ;;  %v121_v29 = vld [vmem:[%s398_s5 + $0x28] sm:$0xff]  ;;  %v120_v30 = vld [vmem:[%s398_s5 + $0x20] sm:$0xff]  ;;  %v119_v31 = vld [vmem:[%s398_s5 + $0x18] sm:$0xff] }
  0x11   :  { %138 = vmatpush.msra.mxu2 %v129_v21  ;;  %v180_v32 = vld [vmem:[%s395_s2] ss:$0 sm:$0xff]  ;;  %v118_v36 = vld [vmem:[%s398_s5 + $0x10] sm:$0xff]  ;;  %v117_v37 = vld [vmem:[%s398_s5 + $0x8] sm:$0xff] }
  0x12   :  { %100 = vmatpush.msra.mxu1 %v85_v8  ;;  %v116_v38 = vld [vmem:[%s398_s5] sm:$0xff] }
  0x13   :  { %139 = vmatpush.msra.mxu2 %v128_v22  ;;  %v181_v39 = vld [vmem:[%s397_s4] ss:$0 sm:$0xff] }
  0x14   :  { %101 = vmatpush.msra.mxu1 %v84_v9  ;;  %v182_v43 = vld [vmem:[%s399_s6] ss:$0 sm:$0xff] }
  0x15   :  { %140 = vmatpush.msra.mxu2 %v127_v23 }
  0x16   :  { %102 = vmatpush.msra.mxu1 %v83_v10 }
  0x17   :  { %141 = vmatpush.msra.mxu2 %v126_v24 }
  0x18   :  { %103 = vmatpush.msra.mxu1 %v82_v11 }
  0x19   :  { %142 = vmatpush.msra.mxu2 %v125_v25 }
  0x1a   :  { %104 = vmatpush.msra.mxu1 %v81_v12 }
  0x1b   :  { %143 = vmatpush.msra.mxu2 %v124_v26 }
  0x1c   :  { %105 = vmatpush.msra.mxu1 %v80_v13 }
  0x1d   :  { %144 = vmatpush.msra.mxu2 %v123_v27 }
  0x1e   :  { %106 = vmatpush.msra.mxu1 %v79_v14 }
  0x1f   :  { %145 = vmatpush.msra.mxu2 %v122_v28 }
  0x20   :  { %107 = vmatpush.msra.mxu1 %v78_v15 }
  0x21   :  { %146 = vmatpush.msra.mxu2 %v121_v29 }
  0x22   :  { %108 = vmatpush.msra.mxu1 %v77_v16 }
  0x23   :  { %147 = vmatpush.msra.mxu2 %v120_v30 }
  0x24   :  { %109 = vmatpush.msra.mxu1 %v76_v17 }
  0x25   :  { %148 = vmatpush.msra.mxu2 %v119_v31 }
  0x26   :  { %110 = vmatpush.msra.mxu1 %v75_v18 }
  0x27   :  { %149 = vmatpush.msra.mxu2 %v118_v36 }
  0x29   :  { %150 = vmatpush.msra.mxu2 %v117_v37 }
  0x2b   :  { %151 = vmatpush.msra.mxu2 %v116_v38 }
  0x87   :  { %v71_v33 = vpop.f32.mrf.mxu0 }
  0x88   :  { %v72_v34 = vadd.f32 %v180_v32, %v71_v33 }
  0x8a   :  { %v74_v35 = vmax.f32 %v72_v34, 0.0 }
  0x8c   :  { %111 = vmatmul.f32.vlgmr.msra.gmra.mxu1 %v74_v35 }
 0x109   :  { %v112_v40 = vpop.f32.mrf.mxu1 }
 0x10a   :  { %v113_v41 = vadd.f32 %v181_v39, %v112_v40 }
 0x10c   :  { %v115_v42 = vmax.f32 %v113_v41, 0.0 }
 0x10e   :  { %152 = vmatmul.f32.vlgmr.msra.gmra.mxu2 %v115_v42 }
 0x191   :  { %v153_v44 = vpop.f32.mrf.mxu2 }
 0x192   :  { %v154_v45 = vadd.f32 %v182_v43, %v153_v44 }
 0x194   :  { %157 = vst.msk [vmem:[#allocation5] sm:$0xff] %vm156_vm1, %v154_v45 }
 0x195   :  { %168 = dma.vmem_to_hbm [thread:$0]  %s164_s26, 128, %s166_s29, [#allocation4]  }
 0x196   :  { %233 = dma.done.wait [#allocation4], 128  }
 0x197   :  { %234 = vsyncadd [#allocation4], 4294967168 }
 0x198   :  { %173 = vsyncpa [#allocation3], 1 }
 0x199   :  { %174 = vsyncpa [#allocation4], 1 }

</bundles_post_ra>
